<compile_context>
chip_gen: v7x
topology: tpu7x:2x2x1
jax: 0.10.0
libtpu: 0.0.40
codegen_flags: <defaults>
</compile_context>

<pallas_src>
import functools

import jax
import jax.numpy as jnp
import numpy as np
from jax.experimental import pallas as pl
from jax.experimental.pallas import tpu as pltpu


def _bc_partial_kernel(idx_ref, ap_ref, sup_ref, coord_ref, target_ref,
                       out_ref, *, batch_size, tile_b):
    """Per-tile partials: [sum(log p_action), sum(log p_unit), sum(sq err)]."""
    pid = pl.program_id(0)

    idx = idx_ref[...]                                   # (TB, 2) int32
    actions = idx[:, 0:1]                                # (TB, 1)
    units = idx[:, 1:2]                                  # (TB, 1)

    ap = ap_ref[...]                                     # (TB, A) native dtype
    sup = sup_ref[...]                                   # (TB, U) native dtype
    coords = coord_ref[...].astype(jnp.float32)          # (TB, C)
    target = target_ref[...].astype(jnp.float32)         # (TB, C)

    tb, num_actions = ap.shape
    num_units = sup.shape[1]

    # Mask rows past the true batch size (last tile may be ragged).
    row = pid * tile_b + jax.lax.broadcasted_iota(jnp.int32, (tb, 1), 0)
    valid = row < batch_size                             # (TB, 1) bool

    # action_probs.gather(1, actions_taken): one-hot mask + row-sum gather,
    # done in the native dtype (exact: one non-zero element per row). Only the
    # narrow (TB, 1) selected vector is widened to f32.
    col_a = jax.lax.broadcasted_iota(jnp.int32, (tb, num_actions), 1)
    sel_a = jnp.sum(jnp.where(col_a == actions, ap, jnp.zeros_like(ap)),
                    axis=1, keepdims=True).astype(jnp.float32)
    sel_a = jnp.where(valid, sel_a, 1.0)                 # log(1) = 0 on pad rows

    # selected_unit_probs.gather(1, units_selected) on the pre-gathered (TB, U).
    col_u = jax.lax.broadcasted_iota(jnp.int32, (tb, num_units), 1)
    sel_u = jnp.sum(jnp.where(col_u == units, sup, jnp.zeros_like(sup)),
                    axis=1, keepdims=True).astype(jnp.float32)
    sel_u = jnp.where(valid, sel_u, 1.0)

    # log only on the narrow (TB, 1) gathered vectors.
    sum_log_a = jnp.sum(jnp.log(sel_a))
    sum_log_u = jnp.sum(jnp.log(sel_u))

    diff = coords - target
    sum_sq = jnp.sum(jnp.where(valid, diff * diff, 0.0))

    # Single lane-dense store: partial sums broadcast on sublanes 0..2 of the
    # (1, 8, 128) output block (avoids masked sub-128-lane partial stores).
    sub = jax.lax.broadcasted_iota(jnp.int32, out_ref.shape, 1)
    out_ref[...] = jnp.where(
        sub == 0, sum_log_a,
        jnp.where(sub == 1, sum_log_u,
                  jnp.where(sub == 2, sum_sq, 0.0))).astype(jnp.float32)


def _padded_tile_bytes(rows, cols, dtype):
    r = -(-rows // 8) * 8
    c = -(-cols // 128) * 128
    return r * c * jnp.dtype(dtype).itemsize


def _derive_tile_b(A, U, C, prob_dtype, coord_dtype, vmem_cap,
                   target_step_bytes):
    """Pick a batch tile from a bytes-per-step HBM target, clamped by VMEM."""
    pbytes = jnp.dtype(prob_dtype).itemsize
    cbytes = jnp.dtype(coord_dtype).itemsize
    lane = lambda n: -(-n // 128) * 128
    # Actual HBM bytes streamed per batch row.
    row_hbm = (A + U) * pbytes + 2 * C * cbytes + 2 * 4
    # Padded (lane-128) VMEM bytes per batch row.
    row_vmem = ((lane(A) + lane(U)) * pbytes + 2 * lane(C) * cbytes
                + lane(2) * 4)
    tb_target = max(8, target_step_bytes // row_hbm)
    # Double-buffered input tiles must fit well inside the VMEM budget.
    tb_vmem = max(8, (vmem_cap // 2) // (2 * row_vmem))
    tb = min(int(tb_target), int(tb_vmem), 8192)
    return max(8, (tb // 8) * 8)


def behavior_cloning_loss(outputs, actions_taken, units_selected, coords_taken,
                          action_weight=1.0, unit_weight=1.0, coord_weight=1.0,
                          target_step_bytes=1 << 20, tile_b=None):
    ap = outputs['action_probs']            # (B, A)   native dtype (f32 / bf16)
    up = outputs['unit_probs']              # (B, A, U)
    coords = outputs['coordinates']         # (B, C)
    target = coords_taken                   # (B, C)

    B, A, U = up.shape
    C = coords.shape[1]

    actions = jnp.asarray(actions_taken, jnp.int32).reshape(B, 1)
    units = jnp.asarray(units_selected, jnp.int32).reshape(B, 1)
    # Pack both index vectors into one (B, 2) int32 tile -> single BlockSpec.
    idx = jnp.concatenate([actions, units], axis=1)

    # Hoist the A-dimension row gather out of the kernel: the kernel then only
    # streams B*U unit-prob elements instead of B*A*U.
    sel_up = jnp.take_along_axis(up, actions[:, :, None], axis=1)[:, 0, :]  # (B, U)

    # Generation-aware VMEM capacity (v7x: 64 MiB, v5e/v6e: 128 MiB).
    try:
        vmem_cap = int(pltpu.get_tpu_info().vmem_capacity_bytes)
    except Exception:  # pragma: no cover - conservative fallback
        vmem_cap = 64 << 20

    if tile_b is None:
        tb = _derive_tile_b(A, U, C, ap.dtype, coords.dtype, vmem_cap,
                            target_step_bytes)
    else:
        tb = max(8, (int(tile_b) // 8) * 8)

    if B <= tb:
        if B >= 16:
            # Split into >=2 tiles so the "parallel" grid axis can shard across
            # both TensorCores on v7x even when B fits in one tile.
            half = -(-B // 2)
            tb = -(-half // 8) * 8
        else:
            tb = B  # single full-extent tile (block == full array dim is legal)
    num_tiles = pl.cdiv(B, tb)

    # Scoped-VMEM budget: double-buffered input tiles + output, <=75% physical.
    tile_bytes = (
        _padded_tile_bytes(tb, 2, jnp.int32)
        + _padded_tile_bytes(tb, A, ap.dtype)
        + _padded_tile_bytes(tb, U, sel_up.dtype)
        + _padded_tile_bytes(tb, C, coords.dtype)
        + _padded_tile_bytes(tb, C, target.dtype)
        + 8 * 128 * 4)
    needed = 2 * tile_bytes + (2 << 20)
    vmem_limit = int(min(vmem_cap * 3 // 4, max(needed, 8 << 20)))

    kernel = functools.partial(_bc_partial_kernel, batch_size=B, tile_b=tb)

    partials = pl.pallas_call(
        kernel,
        out_shape=jax.ShapeDtypeStruct((num_tiles, 8, 128), jnp.float32),
        grid=(num_tiles,),
        in_specs=[
            pl.BlockSpec((tb, 2), lambda i: (i, 0)),   # packed [actions, units]
            pl.BlockSpec((tb, A), lambda i: (i, 0)),   # action_probs
            pl.BlockSpec((tb, U), lambda i: (i, 0)),   # gathered unit_probs
            pl.BlockSpec((tb, C), lambda i: (i, 0)),   # coordinates
            pl.BlockSpec((tb, C), lambda i: (i, 0)),   # coords_taken
        ],
        out_specs=pl.BlockSpec((1, 8, 128), lambda i: (i, 0, 0)),
        compiler_params=pltpu.CompilerParams(
            dimension_semantics=("parallel",),
            vmem_limit_bytes=vmem_limit),
    )(idx, ap, sel_up, coords, target)

    sum_log_a = jnp.sum(partials[:, 0, 0])
    sum_log_u = jnp.sum(partials[:, 1, 0])
    sum_sq = jnp.sum(partials[:, 2, 0])

    action_loss = -action_weight * sum_log_a / B
    unit_loss = -unit_weight * sum_log_u / B
    coord_loss = coord_weight * sum_sq / (B * C)
    return {
        'total_loss': action_loss + unit_loss + coord_loss,
        'action_loss': action_loss,
        'unit_loss': unit_loss,
        'coord_loss': coord_loss,
    }


def _reference(outputs, actions, units, coords_taken,
               action_weight=1.0, unit_weight=1.0, coord_weight=1.0):
    B = actions.shape[0]
    gathered_a = jnp.take_along_axis(outputs['action_probs'], actions, axis=1)
    action_loss = -action_weight * jnp.mean(jnp.log(gathered_a))
    sel_rows = outputs['unit_probs'][jnp.arange(B), actions[:, 0]]
    gathered_u = jnp.take_along_axis(sel_rows, units, axis=1)
    unit_loss = -unit_weight * jnp.mean(jnp.log(gathered_u))
    coord_loss = coord_weight * jnp.mean(
        (outputs['coordinates'] - coords_taken) ** 2)
    return {
        'total_loss': action_loss + unit_loss + coord_loss,
        'action_loss': action_loss,
        'unit_loss': unit_loss,
        'coord_loss': coord_loss,
    }


def _check(result, ref):
    for name in ('total_loss', 'action_loss', 'unit_loss', 'coord_loss'):
        np.testing.assert_allclose(np.asarray(result[name]),
                                   np.asarray(ref[name]),
                                   rtol=1e-5, atol=1e-5)


if __name__ == "__main__":
    B, A, U, C = 16, 16, 32, 2
    key = jax.random.PRNGKey(0)
    k1, k2, k3, k4, k5, k6 = jax.random.split(key, 6)

    action_probs = jax.nn.softmax(jax.random.normal(k1, (B, A)), axis=-1)
    unit_probs = jax.nn.softmax(jax.random.normal(k2, (B, A, U)), axis=-1)
    coordinates = jax.random.normal(k3, (B, C))
    outputs = {
        'action_probs': action_probs,
        'unit_probs': unit_probs,
        'coordinates': coordinates,
    }
    actions_taken = jax.random.randint(k4, (B, 1), 0, A, dtype=jnp.int32)
    units_selected = jax.random.randint(k5, (B, 1), 0, U, dtype=jnp.int32)
    coords_taken = jax.random.normal(k6, (B, C))

    ref = _reference(outputs, actions_taken, units_selected, coords_taken)

    # Default path: derived tile, megacore split -> 2 tiles of 8 rows.
    result = behavior_cloning_loss(outputs, actions_taken, units_selected,
                                   coords_taken)
    result = jax.block_until_ready(result)
    _check(result, ref)

    # Explicit multi-tile path (grid of 2 tiles of 8 rows each).
    result = behavior_cloning_loss(outputs, actions_taken, units_selected,
                                   coords_taken, tile_b=8)
    result = jax.block_until_ready(result)
    _check(result, ref)

    # Ragged last tile: B=13 with 8-row tiles exercises the validity masking.
    Bo = 13
    outputs_odd = {k: v[:Bo] for k, v in outputs.items()}
    result_odd = behavior_cloning_loss(outputs_odd, actions_taken[:Bo],
                                       units_selected[:Bo], coords_taken[:Bo],
                                       tile_b=8)
    result_odd = jax.block_until_ready(result_odd)
    ref_odd = _reference(outputs_odd, actions_taken[:Bo], units_selected[:Bo],
                         coords_taken[:Bo])
    _check(result_odd, ref_odd)

    print("KERNEL_OK")
</pallas_src>

<mosaic_0001>
module attributes {stable_mosaic.version = 11 : i64} {
  func.func @_bc_partial_kernel(%arg0: i32, %arg1: memref<8x2xi32, #tpu.memory_space<vmem>>, %arg2: memref<8x16xf32, #tpu.memory_space<vmem>>, %arg3: memref<8x32xf32, #tpu.memory_space<vmem>>, %arg4: memref<8x2xf32, #tpu.memory_space<vmem>>, %arg5: memref<8x2xf32, #tpu.memory_space<vmem>>, %arg6: memref<1x8x128xf32, #tpu.memory_space<vmem>>) attributes {dimension_semantics = [#tpu.dimension_semantics<parallel>], iteration_bounds = array<i64: 2>, scalar_prefetch = 0 : i64, scratch_operands = 0 : i64, tpu.core_type = #tpu.core_type<tc>, window_params = [{transform_indices = @transform_0, window_bounds = array<i64: 8, 2>}, {transform_indices = @transform_1, window_bounds = array<i64: 8, 16>}, {transform_indices = @transform_2, window_bounds = array<i64: 8, 32>}, {transform_indices = @transform_3, window_bounds = array<i64: 8, 2>}, {transform_indices = @transform_4, window_bounds = array<i64: 8, 2>}, {transform_indices = @transform_5, window_bounds = array<i64: 1, 8, 128>}]} {
    %c0 = arith.constant 0 : index
    %c0_0 = arith.constant 0 : index
    %0 = vector.load %arg1[%c0, %c0_0] : memref<8x2xi32, #tpu.memory_space<vmem>>, vector<8x2xi32>
    %1 = vector.extract_strided_slice %0 {offsets = [0, 0], sizes = [8, 1], strides = [1, 1]} : vector<8x2xi32> to vector<8x1xi32>
    %2 = vector.extract_strided_slice %0 {offsets = [0, 1], sizes = [8, 1], strides = [1, 1]} : vector<8x2xi32> to vector<8x1xi32>
    %c0_1 = arith.constant 0 : index
    %c0_2 = arith.constant 0 : index
    %3 = vector.load %arg2[%c0_1, %c0_2] : memref<8x16xf32, #tpu.memory_space<vmem>>, vector<8x16xf32>
    %c0_3 = arith.constant 0 : index
    %c0_4 = arith.constant 0 : index
    %4 = vector.load %arg3[%c0_3, %c0_4] : memref<8x32xf32, #tpu.memory_space<vmem>>, vector<8x32xf32>
    %c0_5 = arith.constant 0 : index
    %c0_6 = arith.constant 0 : index
    %5 = vector.load %arg4[%c0_5, %c0_6] : memref<8x2xf32, #tpu.memory_space<vmem>>, vector<8x2xf32>
    %c0_7 = arith.constant 0 : index
    %c0_8 = arith.constant 0 : index
    %6 = vector.load %arg5[%c0_7, %c0_8] : memref<8x2xf32, #tpu.memory_space<vmem>>, vector<8x2xf32>
    %c8_i32 = arith.constant 8 : i32
    %7 = arith.muli %arg0, %c8_i32 : i32
    %8 = tpu.iota {dimensions = array<i32: 0>} : vector<8x1xi32>
    %9 = vector.broadcast %7 : i32 to vector<8x1xi32>
    %10 = arith.addi %9, %8 : vector<8x1xi32>
    %c16_i32 = arith.constant 16 : i32
    %11 = vector.broadcast %c16_i32 : i32 to vector<8x1xi32>
    %12 = arith.cmpi slt, %10, %11 : vector<8x1xi32>
    %13 = tpu.iota {dimensions = array<i32: 1>} : vector<8x16xi32>
    %14 = vector.broadcast %1 : vector<8x1xi32> to vector<8x16xi32>
    %15 = arith.cmpi eq, %13, %14 : vector<8x16xi32>
    %cst = arith.constant 0.000000e+00 : f32
    %16 = vector.broadcast %cst : f32 to vector<8x16xf32>
    %17 = arith.select %15, %3, %16 : vector<8x16xi1>, vector<8x16xf32>
    %cst_9 = arith.constant dense<0.000000e+00> : vector<8xf32>
    %18 = vector.multi_reduction <add>, %17, %cst_9 [1] : vector<8x16xf32> to vector<8xf32>
    %19 = vector.shape_cast %18 : vector<8xf32> to vector<8x1xf32>
    %cst_10 = arith.constant 1.000000e+00 : f32
    %20 = vector.broadcast %cst_10 : f32 to vector<8x1xf32>
    %21 = arith.select %12, %19, %20 : vector<8x1xi1>, vector<8x1xf32>
    %22 = tpu.iota {dimensions = array<i32: 1>} : vector<8x32xi32>
    %23 = vector.broadcast %2 : vector<8x1xi32> to vector<8x32xi32>
    %24 = arith.cmpi eq, %22, %23 : vector<8x32xi32>
    %cst_11 = arith.constant 0.000000e+00 : f32
    %25 = vector.broadcast %cst_11 : f32 to vector<8x32xf32>
    %26 = arith.select %24, %4, %25 : vector<8x32xi1>, vector<8x32xf32>
    %cst_12 = arith.constant dense<0.000000e+00> : vector<8xf32>
    %27 = vector.multi_reduction <add>, %26, %cst_12 [1] : vector<8x32xf32> to vector<8xf32>
    %28 = vector.shape_cast %27 : vector<8xf32> to vector<8x1xf32>
    %cst_13 = arith.constant 1.000000e+00 : f32
    %29 = vector.broadcast %cst_13 : f32 to vector<8x1xf32>
    %30 = arith.select %12, %28, %29 : vector<8x1xi1>, vector<8x1xf32>
    %31 = math.log %21 : vector<8x1xf32>
    %32 = vector.shape_cast %31 : vector<8x1xf32> to vector<1x8x1xf32>
    %cst_14 = arith.constant dense<0.000000e+00> : vector<1xf32>
    %33 = vector.multi_reduction <add>, %32, %cst_14 [1, 2] : vector<1x8x1xf32> to vector<1xf32>
    %34 = vector.shape_cast %33 : vector<1xf32> to vector<1x1x1xf32>
    %35 = vector.extract %34[0, 0, 0] : f32 from vector<1x1x1xf32>
    %36 = math.log %30 : vector<8x1xf32>
    %37 = vector.shape_cast %36 : vector<8x1xf32> to vector<1x8x1xf32>
    %cst_15 = arith.constant dense<0.000000e+00> : vector<1xf32>
    %38 = vector.multi_reduction <add>, %37, %cst_15 [1, 2] : vector<1x8x1xf32> to vector<1xf32>
    %39 = vector.shape_cast %38 : vector<1xf32> to vector<1x1x1xf32>
    %40 = vector.extract %39[0, 0, 0] : f32 from vector<1x1x1xf32>
    %41 = arith.subf %5, %6 : vector<8x2xf32>
    %42 = arith.mulf %41, %41 : vector<8x2xf32>
    %cst_16 = arith.constant 0.000000e+00 : f32
    %43 = vector.shape_cast %12 : vector<8x1xi1> to vector<8x1xi1>
    %44 = vector.broadcast %43 : vector<8x1xi1> to vector<8x2xi1>
    %45 = vector.broadcast %cst_16 : f32 to vector<8x2xf32>
    %46 = arith.select %44, %42, %45 : vector<8x2xi1>, vector<8x2xf32>
    %47 = vector.shape_cast %46 : vector<8x2xf32> to vector<1x8x2xf32>
    %cst_17 = arith.constant dense<0.000000e+00> : vector<1xf32>
    %48 = vector.multi_reduction <add>, %47, %cst_17 [1, 2] : vector<1x8x2xf32> to vector<1xf32>
    %49 = vector.shape_cast %48 : vector<1xf32> to vector<1x1x1xf32>
    %50 = vector.extract %49[0, 0, 0] : f32 from vector<1x1x1xf32>
    %51 = tpu.iota {dimensions = array<i32: 1>} : vector<1x8x128xi32>
    %c0_i32 = arith.constant 0 : i32
    %52 = vector.broadcast %c0_i32 : i32 to vector<1x8x128xi32>
    %53 = arith.cmpi eq, %51, %52 : vector<1x8x128xi32>
    %c1_i32 = arith.constant 1 : i32
    %54 = vector.broadcast %c1_i32 : i32 to vector<1x8x128xi32>
    %55 = arith.cmpi eq, %51, %54 : vector<1x8x128xi32>
    %c2_i32 = arith.constant 2 : i32
    %56 = vector.broadcast %c2_i32 : i32 to vector<1x8x128xi32>
    %57 = arith.cmpi eq, %51, %56 : vector<1x8x128xi32>
    %cst_18 = arith.constant 0.000000e+00 : f32
    %58 = vector.broadcast %50 : f32 to vector<1x8x128xf32>
    %59 = vector.broadcast %cst_18 : f32 to vector<1x8x128xf32>
    %60 = arith.select %57, %58, %59 : vector<1x8x128xi1>, vector<1x8x128xf32>
    %61 = vector.broadcast %40 : f32 to vector<1x8x128xf32>
    %62 = arith.select %55, %61, %60 : vector<1x8x128xi1>, vector<1x8x128xf32>
    %63 = vector.broadcast %35 : f32 to vector<1x8x128xf32>
    %64 = arith.select %53, %63, %62 : vector<1x8x128xi1>, vector<1x8x128xf32>
    %c0_19 = arith.constant 0 : index
    %c0_20 = arith.constant 0 : index
    %c0_21 = arith.constant 0 : index
    %65 = vector.load %arg6[%c0_19, %c0_20, %c0_21] : memref<1x8x128xf32, #tpu.memory_space<vmem>>, vector<1x8x128xf32>
    tpu.vector_store %arg6[%c0_19, %c0_20, %c0_21], %64 {strides = array<i32>} : memref<1x8x128xf32, #tpu.memory_space<vmem>>, vector<1x8x128xf32>,
    return
  }
  func.func @transform_0(%arg0: i32) -> (i32, i32) {
    %c0_i32 = arith.constant 0 : i32
    %c0_i32_0 = arith.constant 0 : i32
    return %arg0, %c0_i32 : i32, i32
  }
  func.func @transform_1(%arg0: i32) -> (i32, i32) {
    %c0_i32 = arith.constant 0 : i32
    %c0_i32_0 = arith.constant 0 : i32
    return %arg0, %c0_i32 : i32, i32
  }
  func.func @transform_2(%arg0: i32) -> (i32, i32) {
    %c0_i32 = arith.constant 0 : i32
    %c0_i32_0 = arith.constant 0 : i32
    return %arg0, %c0_i32 : i32, i32
  }
  func.func @transform_3(%arg0: i32) -> (i32, i32) {
    %c0_i32 = arith.constant 0 : i32
    %c0_i32_0 = arith.constant 0 : i32
    return %arg0, %c0_i32 : i32, i32
  }
  func.func @transform_4(%arg0: i32) -> (i32, i32) {
    %c0_i32 = arith.constant 0 : i32
    %c0_i32_0 = arith.constant 0 : i32
    return %arg0, %c0_i32 : i32, i32
  }
  func.func @transform_5(%arg0: i32) -> (i32, i32, i32) {
    %c0_i32 = arith.constant 0 : i32
    %c0_i32_0 = arith.constant 0 : i32
    %c0_i32_1 = arith.constant 0 : i32
    return %arg0, %c0_i32, %c0_i32_0 : i32, i32, i32
  }
}

</mosaic_0001>

<bundles_post_ra>
// kernel: tpu_custom_call.1
= control target key start
LH: loop header
LB: loop body
LE: loop exit
PB: predicated region body
PF: predicated region fallthrough
CT: control target
= control target key end

     0   :  { %10 = vsyncpa [#allocation3], 0  ;;  %s787_s0 = inlined_call_operand.vmem [shape: s32[16,2], index: 0, kind: input, shape index: {}]   ;;  %s788_s1 = inlined_call_operand.vmem [shape: f32[16,16], index: 1, kind: input, shape index: {}]   ;;  %s789_s2 = inlined_call_operand.vmem [shape: f32[16,32], index: 2, kind: input, shape index: {}]   ;;  %s790_s3 = inlined_call_operand.vmem [shape: f32[16,2], index: 3, kind: input, shape index: {}]   ;;  %s791_s4 = inlined_call_operand.vmem [shape: f32[16,2], index: 4, kind: input, shape index: {}]   ;;  %s792_s5 = inlined_call_operand.hbm [shape: f32[2,8,128], index: 5, kind: output, shape index: {}]  }
   0x1   :  { %12 = vsyncpa [#allocation3 + $0x1], 0  ;;  %s658_s18 = smov 0   ;;  %s660_s19 = smov 0  }
   0x2   :  { %s662_s20 = smov 0   ;;  %s664_s21 = smov 0  }
   0x3 LB: > { %s679_s22 = sadd.s32 4294967295, %s623_s21   ;;  %s493_s23 = sadd.s32 4294967294, %s623_s21   ;;  %s623_s21 = sphi %s664_s21, %s798_s21   ;;  %s619_s20 = sphi %s662_s20, %s797_s20   ;;  %s615_s19 = sphi %s660_s19, %s796_s19   ;;  %s611_s18 = sphi %s658_s18, %s795_s18  }
   0x4   : > { %s683_s24 = sadd.s32 1, %s623_s21   ;;  %s155_s25 = sadd.s32 1, %s619_s20 }
   0x5   : > { %s152_s26 = ssub.s32 %s623_s21, %s683_s24  ;;  %p165_p0 = scmp.ne.s32.totalorder %s619_s20, %s615_s19 }
   0x6   : > { %p153_p1 = scmp.eq.s32.totalorder %s152_s26, 0  ;;  %p166_p2 = scmp.eq.s32.totalorder %s679_s22, 1 }
   0x7   : > { %p171_p3 = scmp.ne.s32.totalorder %s615_s19, %s611_s18  ;;  %p172_p4 = scmp.eq.s32.totalorder %s493_s23, 1 }
   0x8   : > { %s694_s27 = scalar_select %p153_p1, %s619_s20, %s155_s25  }
   0x9   : > { %p696_p5 = por %p166_p2, %p165_p0  ;;  %p700_p6 = por %p172_p4, %p171_p3 }
   0xa   : > { %p496_p7 = scmp.ge.s32.totalorder %s623_s21, 1  ;;  %p225_p8 = scmp.lt.s32.totalorder %s623_s21, 3 }
   0xc   : > { %p226_p9 = pnand %p496_p7, %p225_p8 }
   0xd   : > { %p268_p10 = scmp.lt.s32.totalorder (!%p226_p9), %s679_s22, 1  ;;  %v625_v0 = vmov (!%p226_p9), 0   ;;  %v626_v2 = vmov (!%p226_p9), 1   ;;  %v294_v3 = vlaneseq (!%p226_p9)  ;;  %vm306_vm0 = vcmask (!%p226_p9), 130048   ;;  %s503_s16 = sshll.u32 (!%p226_p9), %s679_s22, 3 }
   0xe   : > { %229 = sbr.rel (%p226_p9) target bundleno = 542 (0x21e), region = 40  ;;  %555 = vset.pattern.permute.xlu0 (!%p226_p9), %v625_v0  ;;  %vm316_vm2 = vcmask (!%p226_p9), 261120   ;;  %v296_v14 = vstv (!%p226_p9), %s503_s16  ;;  %vm323_vm5 = vcmask (!%p226_p9), 7168   ;;  %vm351_vm6 = vcmask (!%p226_p9), 15360   ;;  %s505_s11 = sshll.u32 (!%p226_p9), %s679_s22, 7 }
   0xf   : > { %v300_v4 = vand.u32 (!%p226_p9), 127, %v294_v3  ;;  %v723_v13 = vshrl.u32 (!%p226_p9), %v294_v3, 7  ;;  %s745_s17 = scalar_lea.hbm (!%p226_p9), %s792_s5, %s505_s11 }
  0x11   : > { %v297_v15 = vadd.s32 (!%p226_p9), %v296_v14, %v723_v13  ;;  %vm364_vm7 = vcmp.eq.s32.totalorder (!%p226_p9), %v723_v13, 2  ;;  %vm363_vm8 = vcmp.eq.s32.totalorder (!%p226_p9), %v723_v13, 1  ;;  %vm362_vm9 = vcmp.eq.s32.totalorder (!%p226_p9), %v723_v13, 0 }
  0x13   : > { %vm298_vm4 = vcmp.lt.s32.totalorder (!%p226_p9), %v297_v15, 16 }
  0x15   : > { %s269_s30 = scalar_select %p268_p10, %s679_s22, 1 }
  0x17   : > { %s708_s6 = sshll.u32 %s269_s30, 3 }
  0x18   : > { %s271_s9 = scalar_lea.vmem %s787_s0, %s708_s6  ;;  %s275_s12 = scalar_lea.vmem %s788_s1, %s708_s6 }
  0x19   : > { %v288_v1 = vld [vmem:[%s271_s9] sm:$0xff]  ;;  %s279_s15 = scalar_lea.vmem %s789_s2, %s708_s6  ;;  %s283_s25 = scalar_lea.vmem %s790_s3, %s708_s6 }
  0x1a   : > { %302 = vperm.xlu0 %555, %v288_v1   ;;  %v289_v5 = vld [vmem:[%s275_s12] sm:$0xff]  ;;  %s287_s7 = scalar_lea.vmem %s791_s4, %s708_s6  ;;  %s265_s6 = sand.u32 1, %s615_s19  }
  0x1b   : > { %v290_v9 = vld [vmem:[%s279_s15] sm:$0xff]  ;;  %s497_s8 = sshll.u32 %s265_s6, 3  ;;  %s373_s22 = scalar_lea.sflag [#allocation3], %s265_s6 }
  0x1c   : > { %v291_v18 = vld [vmem:[%s283_s25] sm:$0xff]  ;;  %s267_s13 = scalar_lea.vmem [#allocation2], %s497_s8  ;;  %s627_s25 = smov [#allocation2]  }
  0x1d   : > { %v292_v19 = vld [vmem:[%s287_s7] sm:$0xff]  ;;  %s386_s14 = sshll.u32 %s267_s13, 4  ;;  %s565_s26 = sshll.u32 %s627_s25, 4  ;;  %s747_s14 = int_to_ptr.vmem [resolvable:$true] %s386_s14  ;;  %s566_s26 = int_to_ptr.vmem [resolvable:$false] %s565_s26 }
  0x1e   : > { %556 = vset.pattern.permute.xlu0 %v626_v2  ;;  %v346_v22 = vsub.f32 %v291_v18, %v292_v19  ;;  %s561_s23 = scalar_lea.vmem %s747_s14, 128  ;;  %s567_s30 = scalar_lea.vmem %s566_s26, 256 }
  0x1f   : > { %312 = vperm.xlu0 %556, %v288_v1   ;;  %p562_p11 = scmp.ne.s32.totalorder %s747_s14, %s561_s23  ;;  %p568_p0 = scmp.lt.s32.totalorder %s747_s14, %s566_s26 }
  0x20   : > { %v347_v23 = vmul.f32 %v346_v22, %v346_v22  ;;  %p569_p1 = scmp.lt.s32.totalorder %s567_s30, %s561_s23 }
  0x21   : > { %p563_p12 = pnand %p562_p11, %p696_p5 }
  0x22   : > { %v350_v26 = vsel %vm298_vm4, %v347_v23, 0.0  ;;  %p570_p2 = por %p569_p1, %p568_p0 }
  0x23   : > { %v352_v29 = vsel %vm351_vm6, %v350_v26, 0.0  ;;  %p564_p13 = pneg %p563_p12 }
  0x25   : > { %p571_p3 = pnand %p570_p2, %p564_p13 }
  0x99   : > { %v303_v6 = vpop.permute.xlu0 %302 }
  0x9a   : > { %vm304_vm1 = vcmp.eq.s32.totalorder %v300_v4, %v303_v6 }
  0x9b   : > { %v305_v7 = vsel %vm304_vm1, %v289_v5, 0.0 }
  0x9c   : > { %v307_v8 = vsel %vm306_vm0, %v305_v7, 0.0 }
  0x9d   : > { %308 = vadd.xlane.f32.xlu1 %v307_v8 }
  0x9e   : > { %v313_v10 = vpop.permute.xlu0 %312 }
  0x9f   : > { %vm314_vm3 = vcmp.eq.s32.totalorder %v300_v4, %v313_v10 }
  0xa0   : > { %v315_v11 = vsel %vm314_vm3, %v290_v9, 0.0 }
  0xa1   : > { %v317_v12 = vsel %vm316_vm2, %v315_v11, 0.0 }
  0xa2   : > { %318 = vadd.xlane.f32.xlu1 %v317_v12 }
 0x12a   : > { %v309_v16 = vpop.xlane.xlu1 %308 }
 0x12b   : > { %v310_v17 = vsel %vm298_vm4, %v309_v16, 1.0 }
 0x12c   : > { %557 = vlog2.f32 %v310_v17 }
 0x12f   : > { %v319_v20 = vpop.xlane.xlu1 %318 }
 0x130   : > { %v320_v21 = vsel %vm298_vm4, %v319_v20, 1.0 }
 0x131   : > { %559 = vlog2.f32 %v320_v21 }
 0x136   : > { %v558_v24 = vpop.eup %557 }
 0x137   : > { %v322_v25 = vmul.f32 0.6931472, %v558_v24 }
 0x139   : > { %v324_v27 = vsel %vm323_vm5, %v322_v25, 0.0 }
 0x13a   : > { %325 = vadd.xlane.f32.xlu1 %v324_v27 }
 0x13b   : > { %v560_v28 = vpop.eup %559 }
 0x13c   : > { %v335_v30 = vmul.f32 0.6931472, %v560_v28 }
 0x13e   : > { %353 = vadd.xlane.f32.xlu1 %v352_v29  ;;  %v336_v31 = vsel %vm323_vm5, %v335_v30, 0.0 }
 0x13f   : > { %337 = vadd.xlane.f32.xlu0 %v336_v31 }
 0x1c7   : > { %v326_v32 = vpop.xlane.xlu1 %325 }
 0x1c8   : > { %v327_v33 = vrot.slane %v326_v32, 4 }
 0x1ca   : > { %v328_v34 = vadd.f32 %v327_v33, %v326_v32 }
 0x1cb   : > { %v354_v35 = vpop.xlane.xlu1 %353 }
 0x1cc   : > { %v329_v36 = vrot.slane %v328_v34, 2  ;;  %v355_v37 = vrot.slane %v354_v35, 4  ;;  %v338_v38 = vpop.xlane.xlu0 %337 }
 0x1cd   : > { %v339_v39 = vrot.slane %v338_v38, 4 }
 0x1ce   : > { %v356_v40 = vadd.f32 %v355_v37, %v354_v35  ;;  %v330_v41 = vadd.f32 %v329_v36, %v328_v34 }
 0x1cf   : > { %v340_v42 = vadd.f32 %v339_v39, %v338_v38 }
 0x1d0   : > { %v357_v43 = vrot.slane %v356_v40, 2  ;;  %v331_v44 = vrot.slane %v330_v41, 1 }
 0x1d1   : > { %v341_v45 = vrot.slane %v340_v42, 2 }
 0x1d2   : > { %v358_v46 = vadd.f32 %v357_v43, %v356_v40  ;;  %v332_v47 = vadd.f32 %v331_v44, %v330_v41 }
 0x1d3   : > { %v342_v48 = vadd.f32 %v341_v45, %v340_v42 }
 0x1d4   : > { %508 = vpush %v332_v47  ;;  %v359_v49 = vrot.slane %v358_v46, 1 }
 0x1d5   : > { %v343_v50 = vrot.slane %v342_v48, 1 }
 0x1d6   : > { %v360_v51 = vadd.f32 %v359_v49, %v358_v46 }
 0x1d7   : > { %v344_v52 = vadd.f32 %v343_v50, %v342_v48 }
 0x1d9   : > { %510 = vpush %v344_v52 }
 0x1da   : > { %512 = vpush %v360_v51 }
 0x205   : > { %s509_s9 = spop %508 }
 0x206   : > { %v369_v56 = vstv %s509_s9 }
 0x20a   : > { %s511_s10 = spop %510 }
 0x20b   : > { %v367_v53 = vstv %s511_s10  ;;  %s513_s12 = spop %512 }
 0x20c   : > { %v365_v54 = vstv %s513_s12 }
 0x20d   : > { %v366_v55 = vsel %vm364_vm7, %v365_v54, 0.0 }
 0x20e   : > { %v368_v57 = vsel %vm363_vm8, %v367_v53, %v366_v55 }
 0x20f   : > { %v370_v58 = vsel %vm362_vm9, %v369_v56, %v368_v57 }
 0x210   : > { %371 = vst [vmem:[%s267_s13] sm:$0xff] %v370_v58 }
 0x211   : > { %574 = shalt.err (!%p571_p3)
}
 0x212   : > { %s575_s7 = scalar_lea.hbm %s745_s17, 128  ;;  %s579_s9 = scalar_lea.hbm %s792_s5, 256 }
 0x213   : > { %p576_p4 = scmp.ne.s32.totalorder %s745_s17, %s575_s7  ;;  %p580_p9 = scmp.lt.u32.totalorder %s745_s17, %s792_s5 }
 0x214   : > { %p581_p10 = scmp.lt.u32.totalorder %s579_s9, %s575_s7  ;;  %p583_p12 = scmp.lt.u32.totalorder %s575_s7, %s745_s17 }
 0x215   : > { %p577_p7 = pnand %p576_p4, %p696_p5 }
 0x216   : > { %p582_p11 = por %p581_p10, %p580_p9 }
 0x217   : > { %p578_p8 = pneg %p577_p7 }
 0x218   : > { %p584_p13 = por %p583_p12, %p582_p11 }
 0x21a   : > { %p585_p0 = pnand %p584_p13, %p578_p8 }
 0x21c   : > { %588 = shalt.err (!%p585_p0)
}
 0x21d   : > { %514 = dma.vmem_to_hbm [thread:$0]  (%p696_p5), %s747_s14, 128, %s745_s17, %s373_s22  }
 0x21e PF: > { %p520_p1 = scmp.ge.s32.totalorder %s623_s21, 2  ;;  %s398_s12 = sand.u32 1, %s611_s18  }
 0x21f   : > { %s399_s13 = scalar_lea.sflag [#allocation3], %s398_s12 }
 0x220   : > { %p517_p2 = pnand %p520_p1, %p700_p6 }
 0x222   : > { %606 = dma.done.wait (!%p517_p2), %s399_s13, 128  }
 0x223   : > { %608 = vsyncadd (!%p517_p2), %s399_s13, 4294967168  ;;  %p15_p3 = scmp.ge.s32.totalorder %s683_s24, 4   ;;  %s795_s18 = smov %s615_s19 }
 0x224   : > { %s796_s19 = smov %s619_s20  ;;  %s797_s20 = smov %s694_s27 }
 0x225   : > { %s798_s21 = smov %s683_s24  ;;  %17 = sbr.rel (!%p15_p3) target bundleno = 3 (0x3), region = 87 }
 0x22c   :  { %404 = vsyncpa [#allocation3], 1 }
 0x22d   :  { %406 = vsyncpa [#allocation3 + $0x1], 1 }

</bundles_post_ra>
